<compile_context>
chip_gen: v7x
topology: tpu7x:2x2x1
jax: 0.10.0
libtpu: 0.0.40
codegen_flags: <defaults>
</compile_context>

<pallas_src>
import functools

import jax
import jax.numpy as jnp
from jax.experimental import pallas as pl
from jax.experimental.pallas import tpu as pltpu


def _round_up(x, m):
    return ((x + m - 1) // m) * m


def _wce_kernel(pred_ref, tgt_ref, w_ref, num_ref, den_ref,
                m_scr, l_scr, tlog_scr, wrow_scr,
                *, n_rows, n_classes, row_tile, c_tile, mask_rows, mask_cols):
    """2-D grid: (row tiles [parallel], class tiles [arbitrary, online-LSE carry])."""
    i = pl.program_id(0)          # row-tile index (megacore-sharded)
    k = pl.program_id(1)          # class-tile index (sequential reduction)
    nk = pl.num_programs(1)

    @pl.when(k == 0)
    def _init():
        m_scr[...] = jnp.full_like(m_scr, -jnp.inf)
        l_scr[...] = jnp.zeros_like(l_scr)
        tlog_scr[...] = jnp.zeros_like(tlog_scr)
        wrow_scr[...] = jnp.zeros_like(wrow_scr)

    p = pred_ref[...]                                    # (TR, TC) native dtype
    tgt = tgt_ref[...]                                   # (TR, 1) int32
    w = w_ref[...].astype(jnp.float32)                   # (1, TC)

    # global class index of every lane in this class tile (iota compare, no gather)
    cls = k * c_tile + jax.lax.broadcasted_iota(jnp.int32, p.shape, 1)
    t_mask = cls == tgt                                  # (TR, TC) bool

    if mask_cols:
        col_ok = cls < n_classes
        p_max_src = jnp.where(col_ok, p, jnp.full_like(p, -jnp.inf))
    else:
        p_max_src = p

    # ---- online (flash-style) log-sum-exp carry over class tiles ----
    m_prev = m_scr[...]
    m_tile = jnp.max(p_max_src, axis=-1, keepdims=True).astype(jnp.float32)
    m_new = jnp.maximum(m_prev, m_tile)
    e = jnp.exp(p.astype(jnp.float32) - m_new)           # upcast only inside exp pass
    if mask_cols:
        e = jnp.where(col_ok, e, 0.0)
    l_scr[...] = l_scr[...] * jnp.exp(m_prev - m_new) + jnp.sum(
        e, axis=-1, keepdims=True)
    m_scr[...] = m_new

    # ---- target logit + per-row class weight (target hits at most one tile) ----
    tlog_scr[...] += jnp.sum(jnp.where(t_mask, p, jnp.zeros_like(p)),
                             axis=-1, keepdims=True).astype(jnp.float32)
    wrow_scr[...] += jnp.sum(jnp.where(t_mask, w, 0.0), axis=-1, keepdims=True)

    @pl.when(k == nk - 1)
    def _finalize():
        nll = m_scr[...] + jnp.log(l_scr[...]) - tlog_scr[...]     # (TR, 1)
        wr = wrow_scr[...]
        num_rows = wr * nll
        den_rows = wr
        if mask_rows:
            # tail rows of a partial last block hold undefined data; use a
            # select (not a x0 multiply) so Inf/NaN cannot poison the sums.
            row_id = i * row_tile + jax.lax.broadcasted_iota(jnp.int32, wr.shape, 0)
            valid = row_id < n_rows
            num_rows = jnp.where(valid, num_rows, 0.0)
            den_rows = jnp.where(valid, den_rows, 0.0)
        num_ref[0] = jnp.sum(num_rows, axis=0, keepdims=True)       # (1, 1)
        den_ref[0] = jnp.sum(den_rows, axis=0, keepdims=True)       # (1, 1)


def weighted_cross_entropy_loss(pred, target, weight=None):
    """pred: [B, S, C] float (f32 or bf16), target: [B, S] int, weight: [C] or None."""
    B, S, C = pred.shape
    N = B * S

    pred2 = pred.reshape(N, C)                           # keep native dtype on the wire
    # TODO(synk): lane-dense target stream ((tiles, row_tile) layout + in-kernel
    # relayout) would cut target DMA bytes further for small C; kept (N, 1) here
    # for robust lowering.
    tgt2 = target.reshape(N, 1).astype(jnp.int32)
    if weight is None:
        weight = jnp.ones((C,), jnp.float32)             # uniform -> plain mean
    w2 = jnp.asarray(weight, jnp.float32).reshape(1, C)

    itemsize = jnp.dtype(pred2.dtype).itemsize

    # --- class tile: full C when it fits comfortably, else 2048-lane tiles with
    #     an online-LSE carry (vocab-scale C) ---
    c_tile = C if C <= 4096 else 2048                    # 2048 is a multiple of 128
    n_ct = pl.cdiv(C, c_tile)
    mask_cols = (C % c_tile) != 0

    # --- row tile: keep the double-buffered pred tile around ~8 MiB, multiple
    #     of 8, capped at 1024; no divisibility requirement on N ---
    c_lanes = _round_up(c_tile, 128)                     # lane-padded width in VMEM
    budget = 8 << 20
    rt = budget // max(1, 2 * c_lanes * itemsize)
    row_tile = max(8, min(1024, (rt // 8) * 8))
    row_tile = min(row_tile, _round_up(N, 8))
    n_rt = pl.cdiv(N, row_tile)
    mask_rows = (N % row_tile) != 0

    # VMEM budget: capped at 48 MiB (~0.75 of v7x's 64 MiB physical VMEM); large
    # problems shrink tiles instead of raising the limit.
    pred_tile_bytes = row_tile * c_lanes * itemsize
    vmem_limit = int(min(48 << 20, max(32 << 20, 3 * pred_tile_bytes + (4 << 20))))

    kernel = functools.partial(
        _wce_kernel,
        n_rows=N, n_classes=C, row_tile=row_tile, c_tile=c_tile,
        mask_rows=mask_rows, mask_cols=mask_cols)

    num, den = pl.pallas_call(
        kernel,
        out_shape=(
            jax.ShapeDtypeStruct((n_rt, 1, 1), jnp.float32),   # per-row-tile numerator
            jax.ShapeDtypeStruct((n_rt, 1, 1), jnp.float32),   # per-row-tile denominator
        ),
        grid_spec=pltpu.PrefetchScalarGridSpec(
            num_scalar_prefetch=0,
            grid=(n_rt, n_ct),
            in_specs=[
                pl.BlockSpec((row_tile, c_tile), lambda i, k: (i, k)),   # logits
                pl.BlockSpec((row_tile, 1), lambda i, k: (i, 0)),        # targets
                pl.BlockSpec((1, c_tile), lambda i, k: (0, k)),          # class weights
            ],
            out_specs=(
                pl.BlockSpec((1, 1, 1), lambda i, k: (i, 0, 0)),
                pl.BlockSpec((1, 1, 1), lambda i, k: (i, 0, 0)),
            ),
            scratch_shapes=[
                pltpu.VMEM((row_tile, 1), jnp.float32),   # running max
                pltpu.VMEM((row_tile, 1), jnp.float32),   # running sum-exp
                pltpu.VMEM((row_tile, 1), jnp.float32),   # target logit
                pltpu.VMEM((row_tile, 1), jnp.float32),   # per-row class weight
            ],
        ),
        compiler_params=pltpu.CompilerParams(
            dimension_semantics=("parallel", "arbitrary"),   # rows across TCs, classes sequential
            vmem_limit_bytes=vmem_limit,
        ),
    )(pred2, tgt2, w2)

    # tiny final reduction + divide on the host-side XLA graph
    return jnp.sum(num) / jnp.sum(den)


def _reference(pred, target, weight):
    """Pure-JAX reference of F.cross_entropy(..., weight=w, reduction='mean')."""
    B, S, C = pred.shape
    p = pred.reshape(B * S, C).astype(jnp.float32)
    t = target.reshape(-1)
    logp = jax.nn.log_softmax(p, axis=-1)
    nll = -jnp.take_along_axis(logp, t[:, None], axis=-1)[:, 0]
    w = weight[t]
    return jnp.sum(w * nll) / jnp.sum(w)


if __name__ == "__main__":
    key = jax.random.PRNGKey(0)

    # --- main case: shapes implied by the module (batch, seq, classes) ---
    B, S, C = 2, 8, 32
    k1, k2 = jax.random.split(key)
    pred = jax.random.normal(k1, (B, S, C), dtype=jnp.float32)
    target = jax.random.randint(k2, (B, S), 0, C, dtype=jnp.int32)
    weight = jnp.linspace(0.5, 1.5, C, dtype=jnp.float32)

    loss = jax.block_until_ready(weighted_cross_entropy_loss(pred, target, weight))
    ref = _reference(pred, target, weight)
    assert jnp.allclose(loss, ref, rtol=1e-5, atol=1e-5), (loss, ref)

    # --- uniform-weight (weight=None) path ---
    loss_u = jax.block_until_ready(weighted_cross_entropy_loss(pred, target, None))
    ref_u = _reference(pred, target, jnp.ones((C,), jnp.float32))
    assert jnp.allclose(loss_u, ref_u, rtol=1e-5, atol=1e-5), (loss_u, ref_u)

    # --- tail-masking path: N not a multiple of the row tile (no wrapper pad) ---
    B2, S2, C2 = 3, 7, 160
    k3, k4 = jax.random.split(k2)
    pred2 = jax.random.normal(k3, (B2, S2, C2), dtype=jnp.float32)
    target2 = jax.random.randint(k4, (B2, S2), 0, C2, dtype=jnp.int32)
    weight2 = jnp.linspace(0.25, 2.0, C2, dtype=jnp.float32)
    loss2 = jax.block_until_ready(weighted_cross_entropy_loss(pred2, target2, weight2))
    ref2 = _reference(pred2, target2, weight2)
    assert jnp.allclose(loss2, ref2, rtol=1e-5, atol=1e-5), (loss2, ref2)

    print("KERNEL_OK")
</pallas_src>

<mosaic_0001>
module attributes {stable_mosaic.version = 11 : i64} {
  func.func @_wce_kernel(%arg0: i32, %arg1: i32, %arg2: memref<16x32xf32, #tpu.memory_space<vmem>>, %arg3: memref<16x1xi32, #tpu.memory_space<vmem>>, %arg4: memref<1x32xf32, #tpu.memory_space<vmem>>, %arg5: memref<1x1x1xf32, #tpu.memory_space<vmem>>, %arg6: memref<1x1x1xf32, #tpu.memory_space<vmem>>, %arg7: memref<16x1xf32, #tpu.memory_space<vmem>>, %arg8: memref<16x1xf32, #tpu.memory_space<vmem>>, %arg9: memref<16x1xf32, #tpu.memory_space<vmem>>, %arg10: memref<16x1xf32, #tpu.memory_space<vmem>>) attributes {dimension_semantics = [#tpu.dimension_semantics<parallel>, #tpu.dimension_semantics<arbitrary>], iteration_bounds = array<i64: 1, 1>, scalar_prefetch = 0 : i64, scratch_operands = 4 : i64, tpu.core_type = #tpu.core_type<tc>, window_params = [{transform_indices = @transform_0, window_bounds = array<i64: 16, 32>}, {transform_indices = @transform_1, window_bounds = array<i64: 16, 1>}, {transform_indices = @transform_2, window_bounds = array<i64: 1, 32>}, {transform_indices = @transform_3, window_bounds = array<i64: 1, 1, 1>}, {transform_indices = @transform_4, window_bounds = array<i64: 1, 1, 1>}]} {
    %c0_i32 = arith.constant 0 : i32
    %0 = arith.cmpi eq, %arg1, %c0_i32 : i32
    %1 = arith.extui %0 : i1 to i32
    %c0_i32_0 = arith.constant 0 : i32
    %2 = arith.cmpi ne, %1, %c0_i32_0 : i32
    scf.if %2 {
      %cst_29 = arith.constant 0xFF800000 : f32
      %47 = vector.broadcast %cst_29 : f32 to vector<16x1xf32>
      %c0_30 = arith.constant 0 : index
      %c0_31 = arith.constant 0 : index
      %48 = vector.load %arg7[%c0_30, %c0_31] : memref<16x1xf32, #tpu.memory_space<vmem>>, vector<16x1xf32>
      tpu.vector_store %arg7[%c0_30, %c0_31], %47 {strides = array<i32>} : memref<16x1xf32, #tpu.memory_space<vmem>>, vector<16x1xf32>,
      %cst_32 = arith.constant 0.000000e+00 : f32
      %49 = vector.broadcast %cst_32 : f32 to vector<16x1xf32>
      %c0_33 = arith.constant 0 : index
      %c0_34 = arith.constant 0 : index
      %50 = vector.load %arg8[%c0_33, %c0_34] : memref<16x1xf32, #tpu.memory_space<vmem>>, vector<16x1xf32>
      tpu.vector_store %arg8[%c0_33, %c0_34], %49 {strides = array<i32>} : memref<16x1xf32, #tpu.memory_space<vmem>>, vector<16x1xf32>,
      %cst_35 = arith.constant 0.000000e+00 : f32
      %51 = vector.broadcast %cst_35 : f32 to vector<16x1xf32>
      %c0_36 = arith.constant 0 : index
      %c0_37 = arith.constant 0 : index
      %52 = vector.load %arg9[%c0_36, %c0_37] : memref<16x1xf32, #tpu.memory_space<vmem>>, vector<16x1xf32>
      tpu.vector_store %arg9[%c0_36, %c0_37], %51 {strides = array<i32>} : memref<16x1xf32, #tpu.memory_space<vmem>>, vector<16x1xf32>,
      %cst_38 = arith.constant 0.000000e+00 : f32
      %53 = vector.broadcast %cst_38 : f32 to vector<16x1xf32>
      %c0_39 = arith.constant 0 : index
      %c0_40 = arith.constant 0 : index
      %54 = vector.load %arg10[%c0_39, %c0_40] : memref<16x1xf32, #tpu.memory_space<vmem>>, vector<16x1xf32>
      tpu.vector_store %arg10[%c0_39, %c0_40], %53 {strides = array<i32>} : memref<16x1xf32, #tpu.memory_space<vmem>>, vector<16x1xf32>,
    } else {
    }
    %c0 = arith.constant 0 : index
    %c0_1 = arith.constant 0 : index
    %3 = vector.load %arg2[%c0, %c0_1] : memref<16x32xf32, #tpu.memory_space<vmem>>, vector<16x32xf32>
    %c0_2 = arith.constant 0 : index
    %c0_3 = arith.constant 0 : index
    %4 = vector.load %arg3[%c0_2, %c0_3] : memref<16x1xi32, #tpu.memory_space<vmem>>, vector<16x1xi32>
    %c0_4 = arith.constant 0 : index
    %c0_5 = arith.constant 0 : index
    %5 = vector.load %arg4[%c0_4, %c0_5] : memref<1x32xf32, #tpu.memory_space<vmem>>, vector<1x32xf32>
    %c32_i32 = arith.constant 32 : i32
    %6 = arith.muli %arg1, %c32_i32 : i32
    %7 = tpu.iota {dimensions = array<i32: 1>} : vector<16x32xi32>
    %8 = vector.broadcast %6 : i32 to vector<16x32xi32>
    %9 = arith.addi %8, %7 : vector<16x32xi32>
    %10 = vector.broadcast %4 : vector<16x1xi32> to vector<16x32xi32>
    %11 = arith.cmpi eq, %9, %10 : vector<16x32xi32>
    %c0_6 = arith.constant 0 : index
    %c0_7 = arith.constant 0 : index
    %12 = vector.load %arg7[%c0_6, %c0_7] : memref<16x1xf32, #tpu.memory_space<vmem>>, vector<16x1xf32>
    %cst = arith.constant dense<0xFF800000> : vector<16xf32>
    %13 = vector.multi_reduction <maximumf>, %3, %cst [1] : vector<16x32xf32> to vector<16xf32>
    %14 = vector.shape_cast %13 : vector<16xf32> to vector<16x1xf32>
    %15 = arith.maximumf %12, %14 : vector<16x1xf32>
    %16 = vector.broadcast %15 : vector<16x1xf32> to vector<16x32xf32>
    %17 = arith.subf %3, %16 : vector<16x32xf32>
    %18 = math.exp %17 : vector<16x32xf32>
    %c0_8 = arith.constant 0 : index
    %c0_9 = arith.constant 0 : index
    %19 = vector.load %arg8[%c0_8, %c0_9] : memref<16x1xf32, #tpu.memory_space<vmem>>, vector<16x1xf32>
    %20 = arith.subf %12, %15 : vector<16x1xf32>
    %21 = math.exp %20 : vector<16x1xf32>
    %22 = arith.mulf %19, %21 : vector<16x1xf32>
    %cst_10 = arith.constant dense<0.000000e+00> : vector<16xf32>
    %23 = vector.multi_reduction <add>, %18, %cst_10 [1] : vector<16x32xf32> to vector<16xf32>
    %24 = vector.shape_cast %23 : vector<16xf32> to vector<16x1xf32>
    %25 = arith.addf %22, %24 : vector<16x1xf32>
    %c0_11 = arith.constant 0 : index
    %c0_12 = arith.constant 0 : index
    %26 = vector.load %arg8[%c0_11, %c0_12] : memref<16x1xf32, #tpu.memory_space<vmem>>, vector<16x1xf32>
    tpu.vector_store %arg8[%c0_11, %c0_12], %25 {strides = array<i32>} : memref<16x1xf32, #tpu.memory_space<vmem>>, vector<16x1xf32>,
    %c0_13 = arith.constant 0 : index
    %c0_14 = arith.constant 0 : index
    %27 = vector.load %arg7[%c0_13, %c0_14] : memref<16x1xf32, #tpu.memory_space<vmem>>, vector<16x1xf32>
    tpu.vector_store %arg7[%c0_13, %c0_14], %15 {strides = array<i32>} : memref<16x1xf32, #tpu.memory_space<vmem>>, vector<16x1xf32>,
    %c0_15 = arith.constant 0 : index
    %c0_16 = arith.constant 0 : index
    %28 = vector.load %arg9[%c0_15, %c0_16] : memref<16x1xf32, #tpu.memory_space<vmem>>, vector<16x1xf32>
    %cst_17 = arith.constant 0.000000e+00 : f32
    %29 = vector.broadcast %cst_17 : f32 to vector<16x32xf32>
    %30 = arith.select %11, %3, %29 : vector<16x32xi1>, vector<16x32xf32>
    %cst_18 = arith.constant dense<0.000000e+00> : vector<16xf32>
    %31 = vector.multi_reduction <add>, %30, %cst_18 [1] : vector<16x32xf32> to vector<16xf32>
    %32 = vector.shape_cast %31 : vector<16xf32> to vector<16x1xf32>
    %33 = arith.addf %28, %32 : vector<16x1xf32>
    %c0_19 = arith.constant 0 : index
    %c0_20 = arith.constant 0 : index
    %34 = vector.load %arg9[%c0_19, %c0_20] : memref<16x1xf32, #tpu.memory_space<vmem>>, vector<16x1xf32>
    tpu.vector_store %arg9[%c0_19, %c0_20], %33 {strides = array<i32>} : memref<16x1xf32, #tpu.memory_space<vmem>>, vector<16x1xf32>,
    %c0_21 = arith.constant 0 : index
    %c0_22 = arith.constant 0 : index
    %35 = vector.load %arg10[%c0_21, %c0_22] : memref<16x1xf32, #tpu.memory_space<vmem>>, vector<16x1xf32>
    %cst_23 = arith.constant 0.000000e+00 : f32
    %36 = vector.shape_cast %5 : vector<1x32xf32> to vector<1x32xf32>
    %37 = vector.broadcast %36 : vector<1x32xf32> to vector<16x32xf32>
    %38 = vector.broadcast %cst_23 : f32 to vector<16x32xf32>
    %39 = arith.select %11, %37, %38 : vector<16x32xi1>, vector<16x32xf32>
    %cst_24 = arith.constant dense<0.000000e+00> : vector<16xf32>
    %40 = vector.multi_reduction <add>, %39, %cst_24 [1] : vector<16x32xf32> to vector<16xf32>
    %41 = vector.shape_cast %40 : vector<16xf32> to vector<16x1xf32>
    %42 = arith.addf %35, %41 : vector<16x1xf32>
    %c0_25 = arith.constant 0 : index
    %c0_26 = arith.constant 0 : index
    %43 = vector.load %arg10[%c0_25, %c0_26] : memref<16x1xf32, #tpu.memory_space<vmem>>, vector<16x1xf32>
    tpu.vector_store %arg10[%c0_25, %c0_26], %42 {strides = array<i32>} : memref<16x1xf32, #tpu.memory_space<vmem>>, vector<16x1xf32>,
    %c0_i32_27 = arith.constant 0 : i32
    %44 = arith.cmpi eq, %arg1, %c0_i32_27 : i32
    %45 = arith.extui %44 : i1 to i32
    %c0_i32_28 = arith.constant 0 : i32
    %46 = arith.cmpi ne, %45, %c0_i32_28 : i32
    scf.if %46 {
      %c0_29 = arith.constant 0 : index
      %c0_30 = arith.constant 0 : index
      %47 = vector.load %arg7[%c0_29, %c0_30] : memref<16x1xf32, #tpu.memory_space<vmem>>, vector<16x1xf32>
      %c0_31 = arith.constant 0 : index
      %c0_32 = arith.constant 0 : index
      %48 = vector.load %arg8[%c0_31, %c0_32] : memref<16x1xf32, #tpu.memory_space<vmem>>, vector<16x1xf32>
      %49 = math.log %48 : vector<16x1xf32>
      %50 = arith.addf %47, %49 : vector<16x1xf32>
      %c0_33 = arith.constant 0 : index
      %c0_34 = arith.constant 0 : index
      %51 = vector.load %arg9[%c0_33, %c0_34] : memref<16x1xf32, #tpu.memory_space<vmem>>, vector<16x1xf32>
      %52 = arith.subf %50, %51 : vector<16x1xf32>
      %c0_35 = arith.constant 0 : index
      %c0_36 = arith.constant 0 : index
      %53 = vector.load %arg10[%c0_35, %c0_36] : memref<16x1xf32, #tpu.memory_space<vmem>>, vector<16x1xf32>
      %54 = arith.mulf %53, %52 : vector<16x1xf32>
      %cst_37 = arith.constant dense<0.000000e+00> : vector<1xf32>
      %55 = vector.multi_reduction <add>, %54, %cst_37 [0] : vector<16x1xf32> to vector<1xf32>
      %56 = vector.shape_cast %55 : vector<1xf32> to vector<1x1xf32>
      %c0_38 = arith.constant 0 : index
      %c0_39 = arith.constant 0 : index
      %c0_40 = arith.constant 0 : index
      %57 = vector.load %arg5[%c0_38, %c0_39, %c0_40] : memref<1x1x1xf32, #tpu.memory_space<vmem>>, vector<1x1x1xf32>
      %58 = vector.shape_cast %57 : vector<1x1x1xf32> to vector<1x1xf32>
      %59 = vector.shape_cast %56 : vector<1x1xf32> to vector<1x1x1xf32>
      tpu.vector_store %arg5[%c0_38, %c0_39, %c0_40], %59 {strides = array<i32>} : memref<1x1x1xf32, #tpu.memory_space<vmem>>, vector<1x1x1xf32>,
      %cst_41 = arith.constant dense<0.000000e+00> : vector<1xf32>
      %60 = vector.multi_reduction <add>, %53, %cst_41 [0] : vector<16x1xf32> to vector<1xf32>
      %61 = vector.shape_cast %60 : vector<1xf32> to vector<1x1xf32>
      %c0_42 = arith.constant 0 : index
      %c0_43 = arith.constant 0 : index
      %c0_44 = arith.constant 0 : index
      %62 = vector.load %arg6[%c0_42, %c0_43, %c0_44] : memref<1x1x1xf32, #tpu.memory_space<vmem>>, vector<1x1x1xf32>
      %63 = vector.shape_cast %62 : vector<1x1x1xf32> to vector<1x1xf32>
      %64 = vector.shape_cast %61 : vector<1x1xf32> to vector<1x1x1xf32>
      tpu.vector_store %arg6[%c0_42, %c0_43, %c0_44], %64 {strides = array<i32>} : memref<1x1x1xf32, #tpu.memory_space<vmem>>, vector<1x1x1xf32>,
    } else {
    }
    return
  }
  func.func @transform_0(%arg0: i32, %arg1: i32) -> (i32, i32) {
    %c0_i32 = arith.constant 0 : i32
    return %arg0, %arg1 : i32, i32
  }
  func.func @transform_1(%arg0: i32, %arg1: i32) -> (i32, i32) {
    %c0_i32 = arith.constant 0 : i32
    %c0_i32_0 = arith.constant 0 : i32
    return %arg0, %c0_i32 : i32, i32
  }
  func.func @transform_2(%arg0: i32, %arg1: i32) -> (i32, i32) {
    %c0_i32 = arith.constant 0 : i32
    %c0_i32_0 = arith.constant 0 : i32
    return %c0_i32, %arg1 : i32, i32
  }
  func.func @transform_3(%arg0: i32, %arg1: i32) -> (i32, i32, i32) {
    %c0_i32 = arith.constant 0 : i32
    %c0_i32_0 = arith.constant 0 : i32
    %c0_i32_1 = arith.constant 0 : i32
    return %arg0, %c0_i32, %c0_i32_0 : i32, i32, i32
  }
  func.func @transform_4(%arg0: i32, %arg1: i32) -> (i32, i32, i32) {
    %c0_i32 = arith.constant 0 : i32
    %c0_i32_0 = arith.constant 0 : i32
    %c0_i32_1 = arith.constant 0 : i32
    return %arg0, %c0_i32, %c0_i32_0 : i32, i32, i32
  }
}

</mosaic_0001>

<bundles_post_ra>
// kernel: tpu_custom_call.1
= control target key start
LH: loop header
LB: loop body
LE: loop exit
PB: predicated region body
PF: predicated region fallthrough
CT: control target
= control target key end

     0   :  { %10 = vsyncpa [#allocation7], 0  ;;  %vm51_vm0 = vcmask 261120   ;;  %s372_s0 = inlined_call_operand.vmem [shape: f32[16,32], index: 0, kind: input, shape index: {}]   ;;  %s373_s1 = inlined_call_operand.vmem [shape: s32[16,1], index: 1, kind: input, shape index: {}]   ;;  %s374_s2 = inlined_call_operand.vmem [shape: f32[1,32], index: 2, kind: input, shape index: {}]   ;;  %s375_s3 = inlined_call_operand.hbm [shape: f32[1,1,1], index: 3, kind: output, shape index: {0}]   ;;  %s376_s4 = inlined_call_operand.hbm [shape: f32[1,1,1], index: 4, kind: output, shape index: {1}]  }
   0x1   :  { %v31_v0 = vld [vmem:[%s372_s0] sm:$0xff]  ;;  %v32_v1 = vld [vmem:[%s372_s0 + $0x8] sm:$0xff] }
   0x2   :  { %11 = vsyncpa [#allocation9], 0  ;;  %v52_v2 = vsel %vm51_vm0, %v31_v0, -inf  ;;  %v55_v3 = vsel %vm51_vm0, %v32_v1, -inf  ;;  %vm22_vm1 = vcmask 7168   ;;  %v271_v4 = vmov -inf  }
   0x3   :  { %53 = vmax.xlane.f32.xlu0 %v52_v2  ;;  %23 = vst.msk [vmem:[#allocation2] sm:$0xff] %vm22_vm1, %v271_v4  ;;  %24 = vst.msk [vmem:[#allocation2 + $0x8] sm:$0xff] %vm22_vm1, %v271_v4  ;;  %v272_v5 = vmov 0   ;;  %v273_v6 = vmov 0.0   ;;  %v33_v7 = vld [vmem:[%s373_s1] sm:$0xff]  ;;  %v34_v16 = vld [vmem:[%s373_s1 + $0x8] sm:$0xff]  ;;  %v37_v17 = vlaneseq }
   0x4   :  { %209 = vset.pattern.permute.xlu1 %v272_v5  ;;  %210 = vset.pattern.permute.xlu0 %v272_v5  ;;  %25 = vst.msk [vmem:[#allocation3] sm:$0xff] %vm22_vm1, %v273_v6  ;;  %26 = vst.msk [vmem:[#allocation3 + $0x8] sm:$0xff] %vm22_vm1, %v273_v6  ;;  %v203_v34 = vld [vmem:[%s374_s2] ss:$0 sm:$0xff]  ;;  %s274_s2 = smov [#allocation8]   ;;  %vm163_vm4 = vcmask 0  }
   0x5   :  { %27 = vst.msk [vmem:[#allocation4] sm:$0xff] %vm22_vm1, %v273_v6  ;;  %28 = vst.msk [vmem:[#allocation4 + $0x8] sm:$0xff] %vm22_vm1, %v273_v6  ;;  %v38_v19 = vand.u32 127, %v37_v17  ;;  %s191_s23 = sshll.u32 %s274_s2, 4  ;;  %s192_s23 = int_to_ptr.vmem [resolvable:$true] %s191_s23 }
   0x6   :  { %29 = vst.msk [vmem:[#allocation5] sm:$0xff] %vm22_vm1, %v273_v6  ;;  %30 = vst.msk [vmem:[#allocation5 + $0x8] sm:$0xff] %vm22_vm1, %v273_v6  ;;  %s223_s24 = scalar_lea.vmem %s192_s23, 16  ;;  %s227_s25 = scalar_lea.vmem %s192_s23, 32 }
   0x7   :  { %56 = vmax.xlane.f32.xlu0 %v55_v3  ;;  %p224_p0 = scmp.ne.s32.totalorder %s192_s23, %s223_s24  ;;  %p228_p1 = scmp.lt.s32.totalorder %s192_s23, %s192_s23 }
   0x8   :  { %p229_p2 = scmp.lt.s32.totalorder %s227_s25, %s223_s24 }
   0xa   :  { %v49_v8 = vld [vmem:[#allocation2] sm:$0xff]  ;;  %v50_v11 = vld [vmem:[#allocation2 + $0x8] sm:$0xff]  ;;  %p230_p3 = por %p229_p2, %p228_p1 }
   0xb   :  { %v76_v46 = vld [vmem:[#allocation3] sm:$0xff]  ;;  %v77_v50 = vld [vmem:[#allocation3 + $0x8] sm:$0xff] }
   0xc   :  { %v99_v41 = vld [vmem:[#allocation4] sm:$0xff]  ;;  %v100_v55 = vld [vmem:[#allocation4 + $0x8] sm:$0xff]  ;;  %p231_p4 = pnand %p230_p3, %p224_p0 }
   0xd   :  { %v113_v58 = vld [vmem:[#allocation5] sm:$0xff]  ;;  %v114_v62 = vld [vmem:[#allocation5 + $0x8] sm:$0xff] }
  0x1d   :  { %42 = vperm.xlu0 %210, %v33_v7  }
  0x90   :  { %v54_v9 = vpop.xlane.xlu0 %53 }
  0x91   :  { %v58_v10 = vmax.f32 %v49_v8, %v54_v9 }
  0x93   :  { %v78_v12 = vsub.f32 %v49_v8, %v58_v10  ;;  %97 = vst.msk [vmem:[#allocation2] sm:$0xff] %vm22_vm1, %v58_v10  ;;  %62 = vperm.xlu1 %209, %v58_v10  }
  0x94   :  { %v57_v13 = vpop.xlane.xlu0 %56 }
  0x95   :  { %v59_v14 = vmax.f32 %v50_v11, %v57_v13  ;;  %v80_v43 = vmul.f32 1.442695, %v78_v12 }
  0x97   :  { %v79_v15 = vsub.f32 %v50_v11, %v59_v14  ;;  %98 = vst.msk [vmem:[#allocation2 + $0x8] sm:$0xff] %vm22_vm1, %v59_v14  ;;  %67 = vperm.xlu1 %209, %v59_v14  }
  0x99   :  { %v82_v44 = vmul.f32 1.442695, %v79_v15 }
  0x9a   :  { %v136_v5 = vld [vmem:[#allocation2] sm:$0xff] }
  0x9b   :  { %45 = vperm.xlu1 %209, %v34_v16  }
  0x9c   :  { %v43_v18 = vpop.permute.xlu0 %42 }
  0x9d   :  { %vm47_vm2 = vcmp.eq.s32.totalorder %v38_v19, %v43_v18 }
  0x9e   :  { %v101_v20 = vsel %vm47_vm2, %v31_v0, 0.0  ;;  %v121_v35 = vsel %vm47_vm2, %v203_v34, 0.0  ;;  %v137_v13 = vld [vmem:[#allocation2 + $0x8] sm:$0xff] }
  0x9f   :  { %v103_v21 = vsel %vm51_vm0, %v101_v20, 0.0  ;;  %v123_v37 = vsel %vm51_vm0, %v121_v35, 0.0 }
  0xa0   :  { %104 = vadd.xlane.f32.xlu0 %v103_v21 }
 0x112   :  { %v63_v22 = vpop.permute.xlu1 %62 }
 0x113   :  { %v70_v23 = vsub.f32 %v31_v0, %v63_v22 }
 0x115   :  { %v72_v24 = vmul.f32 1.442695, %v70_v23 }
 0x116   :  { %v68_v25 = vpop.permute.xlu1 %67 }
 0x117   :  { %211 = vpow2.f32 %v72_v24  ;;  %v71_v26 = vsub.f32 %v32_v1, %v68_v25 }
 0x119   :  { %v74_v27 = vmul.f32 1.442695, %v71_v26 }
 0x11a   :  { %v46_v29 = vpop.permute.xlu1 %45 }
 0x11b   :  { %213 = vpow2.f32 %v74_v27  ;;  %vm48_vm3 = vcmp.eq.s32.totalorder %v38_v19, %v46_v29 }
 0x11c   :  { %v102_v33 = vsel %vm48_vm3, %v32_v1, 0.0  ;;  %v122_v38 = vsel %vm48_vm3, %v203_v34, 0.0  ;;  %215 = vpow2.f32 %v80_v43 }
 0x11d   :  { %v106_v36 = vsel %vm51_vm0, %v102_v33, 0.0  ;;  %v126_v39 = vsel %vm51_vm0, %v122_v38, 0.0  ;;  %217 = vpow2.f32 %v82_v44 }
 0x121   :  { %v212_v28 = vpop.eup %211 }
 0x122   :  { %v86_v30 = vsel %vm51_vm0, %v212_v28, 0.0 }
 0x123   :  { %87 = vadd.xlane.f32.xlu1 %v86_v30 }
 0x125   :  { %v214_v31 = vpop.eup %213 }
 0x126   :  { %v89_v32 = vsel %vm51_vm0, %v214_v31, 0.0  ;;  %v216_v45 = vpop.eup %215 }
 0x127   :  { %90 = vadd.xlane.f32.xlu1 %v89_v32  ;;  %v84_v47 = vmul.f32 %v216_v45, %v76_v46  ;;  %v218_v48 = vpop.eup %217 }
 0x128   :  { %v85_v52 = vmul.f32 %v218_v48, %v77_v50 }
 0x12b   :  { %107 = vadd.xlane.f32.xlu1 %v106_v36 }
 0x12d   :  { %v105_v40 = vpop.xlane.xlu0 %104 }
 0x12e   :  { %v109_v42 = vadd.f32 %v105_v40, %v99_v41 }
 0x12f   :  { %124 = vadd.xlane.f32.xlu1 %v123_v37 }
 0x130   :  { %111 = vst.msk [vmem:[#allocation4] sm:$0xff] %vm22_vm1, %v109_v42 }
 0x133   :  { %127 = vadd.xlane.f32.xlu1 %v126_v39 }
 0x137   :  { %v146_v6 = vld [vmem:[#allocation4] sm:$0xff] }
 0x1b0   :  { %v88_v49 = vpop.xlane.xlu1 %87 }
 0x1b1   :  { %v92_v51 = vadd.f32 %v88_v49, %v84_v47 }
 0x1b3   :  { %95 = vst.msk [vmem:[#allocation3] sm:$0xff] %vm22_vm1, %v92_v51 }
 0x1b4   :  { %v91_v53 = vpop.xlane.xlu1 %90 }
 0x1b5   :  { %v93_v54 = vadd.f32 %v91_v53, %v85_v52 }
 0x1b7   :  { %96 = vst.msk [vmem:[#allocation3 + $0x8] sm:$0xff] %vm22_vm1, %v93_v54 }
 0x1b8   :  { %v108_v56 = vpop.xlane.xlu1 %107 }
 0x1b9   :  { %v110_v57 = vadd.f32 %v108_v56, %v100_v55 }
 0x1ba   :  { %v138_v59 = vld [vmem:[#allocation3] sm:$0xff] }
 0x1bb   :  { %112 = vst.msk [vmem:[#allocation4 + $0x8] sm:$0xff] %vm22_vm1, %v110_v57  ;;  %219 = vlog2.f32 %v138_v59 }
 0x1bc   :  { %v125_v60 = vpop.xlane.xlu1 %124 }
 0x1bd   :  { %v129_v61 = vadd.f32 %v125_v60, %v113_v58 }
 0x1be   :  { %v139_v63 = vld [vmem:[#allocation3 + $0x8] sm:$0xff] }
 0x1bf   :  { %131 = vst.msk [vmem:[#allocation5] sm:$0xff] %vm22_vm1, %v129_v61  ;;  %221 = vlog2.f32 %v139_v63 }
 0x1c0   :  { %v128_v0 = vpop.xlane.xlu1 %127 }
 0x1c1   :  { %v130_v1 = vadd.f32 %v128_v0, %v114_v62 }
 0x1c2   :  { %v147_v17 = vld [vmem:[#allocation4 + $0x8] sm:$0xff] }
 0x1c3   :  { %132 = vst.msk [vmem:[#allocation5 + $0x8] sm:$0xff] %vm22_vm1, %v130_v1 }
 0x1c5   :  { %v220_v2 = vpop.eup %219 }
 0x1c6   :  { %v141_v3 = vmul.f32 0.6931472, %v220_v2  ;;  %v150_v4 = vld [vmem:[#allocation5] sm:$0xff] }
 0x1c7   :  { %v165_v9 = vsel %vm22_vm1, %v150_v4, 0.0 }
 0x1c8   :  { %v144_v7 = vadd.f32 %v141_v3, %v136_v5 }
 0x1c9   :  { %v222_v8 = vpop.eup %221 }
 0x1ca   :  { %v143_v10 = vmul.f32 0.6931472, %v222_v8  ;;  %v148_v11 = vsub.f32 %v144_v7, %v146_v6  ;;  %v151_v12 = vld [vmem:[#allocation5 + $0x8] sm:$0xff] }
 0x1cb   :  { %v166_v14 = vsel %vm22_vm1, %v151_v12, 0.0 }
 0x1cc   :  { %v145_v15 = vadd.f32 %v143_v10, %v137_v13  ;;  %v167_v16 = vadd.f32 %v166_v14, %v165_v9  ;;  %v152_v19 = vmul.f32 %v150_v4, %v148_v11 }
 0x1ce   :  { %v149_v18 = vsub.f32 %v145_v15, %v147_v17  ;;  %v168_v20 = vrot.slane %v167_v16, 4  ;;  %v154_v23 = vsel %vm22_vm1, %v152_v19, 0.0 }
 0x1d0   :  { %v153_v21 = vmul.f32 %v151_v12, %v149_v18  ;;  %v169_v22 = vadd.f32 %v168_v20, %v167_v16 }
 0x1d2   :  { %v155_v24 = vsel %vm22_vm1, %v153_v21, 0.0  ;;  %v170_v25 = vrot.slane %v169_v22, 2 }
 0x1d3   :  { %v156_v26 = vadd.f32 %v155_v24, %v154_v23 }
 0x1d4   :  { %v171_v27 = vadd.f32 %v170_v25, %v169_v22 }
 0x1d5   :  { %v157_v28 = vrot.slane %v156_v26, 4 }
 0x1d6   :  { %v172_v29 = vrot.slane %v171_v27, 1 }
 0x1d7   :  { %v158_v30 = vadd.f32 %v157_v28, %v156_v26 }
 0x1d8   :  { %v173_v31 = vadd.f32 %v172_v29, %v171_v27 }
 0x1d9   :  { %v159_v32 = vrot.slane %v158_v30, 2 }
 0x1da   :  { %174 = vst.msk [vmem:[#allocation8] sm:$0x1] %vm163_vm4, %v173_v31 }
 0x1db   :  { %v160_v33 = vadd.f32 %v159_v32, %v158_v30 }
 0x1dc   :  { %234 = shalt.err (!%p231_p4)
}
 0x1dd   :  { %s235_s28 = scalar_lea.hbm %s376_s4, 16 }
 0x1de   :  { %p236_p5 = scmp.ne.s32.totalorder %s376_s4, %s235_s28  ;;  %p239_p6 = scmp.lt.u32.totalorder %s235_s28, %s376_s4 }
 0x1e0   :  { %p241_p7 = pnand %p239_p6, %p236_p5 }
 0x1e2   :  { %244 = shalt.err (!%p241_p7)
}
 0x1e3   :  { %194 = dma.vmem_to_hbm [thread:$0]  %s192_s23, 16, %s376_s4, [#allocation9]   ;;  %v161_v34 = vrot.slane %v160_v33, 1 }
 0x1e4   :  { %s275_s9 = smov [#allocation6]  }
 0x1e5   :  { %s181_s10 = sshll.u32 %s275_s9, 4  ;;  %v162_v35 = vadd.f32 %v161_v34, %v160_v33  ;;  %s182_s10 = int_to_ptr.vmem [resolvable:$true] %s181_s10 }
 0x1e6   :  { %s245_s11 = scalar_lea.vmem %s182_s10, 16  ;;  %s249_s12 = scalar_lea.vmem %s182_s10, 32 }
 0x1e7   :  { %164 = vst.msk [vmem:[#allocation6] sm:$0x1] %vm163_vm4, %v162_v35  ;;  %p246_p8 = scmp.ne.s32.totalorder %s182_s10, %s245_s11  ;;  %p250_p9 = scmp.lt.s32.totalorder %s182_s10, %s182_s10 }
 0x1e8   :  { %p251_p10 = scmp.lt.s32.totalorder %s249_s12, %s245_s11 }
 0x1ea   :  { %p252_p11 = por %p251_p10, %p250_p9 }
 0x1ec   :  { %p253_p12 = pnand %p252_p11, %p246_p8 }
 0x1ee   :  { %256 = shalt.err (!%p253_p12)
}
 0x1ef   :  { %s257_s15 = scalar_lea.hbm %s375_s3, 16 }
 0x1f0   :  { %p258_p13 = scmp.ne.s32.totalorder %s375_s3, %s257_s15  ;;  %p261_p0 = scmp.lt.u32.totalorder %s257_s15, %s375_s3 }
 0x1f2   :  { %p263_p1 = pnand %p261_p0, %p258_p13 }
 0x1f4   :  { %266 = shalt.err (!%p263_p1)
}
 0x1f5   :  { %184 = dma.vmem_to_hbm [thread:$0]  %s182_s10, 16, %s375_s3, [#allocation7]  }
 0x1f6   :  { %267 = dma.done.wait [#allocation7], 16  }
 0x1f7   :  { %268 = vsyncadd [#allocation7], 4294967280 }
 0x1f8   :  { %269 = dma.done.wait [#allocation9], 16  }
 0x1f9   :  { %270 = vsyncadd [#allocation9], 4294967280 }
 0x1fa   :  { %201 = vsyncpa [#allocation7], 1 }
 0x1fb   :  { %202 = vsyncpa [#allocation9], 1 }

</bundles_post_ra>
